<compile_context>
chip_gen: v7x
topology: tpu7x:2x2x1
jax: 0.10.0
libtpu: 0.0.40
codegen_flags: <defaults>
</compile_context>

<pallas_src>
import math

import jax
import jax.numpy as jnp
from jax.experimental import pallas as pl
from jax.experimental.pallas import tpu as pltpu

_GELU_C = math.sqrt(2.0 / math.pi)


def _mlp_kernel(x_ref, w1_ref, b1_ref, w2_ref, b2_ref, o_ref, acc_ref):
    # x_ref:(tm,D) w1_ref:(D,th) b1_ref:(1,th) w2_ref:(th,D) b2_ref:(1,D)
    # o_ref:(tm,D) acc_ref:(tm,D) f32
    k = pl.program_id(1)

    @pl.when(k == 0)
    def _():
        acc_ref[...] = jnp.zeros_like(acc_ref)

    x = x_ref[...].astype(w1_ref.dtype)

    # c_fc chunk: (tm, D) @ (D, th) + b1[chunk]; f32 accumulation on the MXU.
    h = jnp.dot(x, w1_ref[...], preferred_element_type=jnp.float32) + b1_ref[...]

    # gelu, tanh approximation (same math as the PyTorch reference), in f32.
    # tanh goes to the EUP and the polynomial to the VALU; both hide under
    # the MXU-bound critical path.
    h_sq = h * h
    inner = (_GELU_C * h) * (1.0 + 0.044715 * h_sq)
    h = 0.5 * h * (1.0 + jnp.tanh(inner))

    # c_proj chunk: accumulate (tm, th) @ (th, D) into the f32 accumulator.
    acc_ref[...] += jnp.dot(h.astype(w2_ref.dtype), w2_ref[...],
                            preferred_element_type=jnp.float32)

    @pl.when(k == pl.num_programs(1) - 1)
    def _():
        o_ref[...] = (acc_ref[...] + b2_ref[...]).astype(o_ref.dtype)


def _round_up(x, m):
    return ((x + m - 1) // m) * m


def _vmem_capacity_bytes():
    # Generation-aware physical VMEM (v7x: 64 MiB/TC, v5e/v6e: 128 MiB).
    cap = 64 << 20  # assume the smallest generation if the query fails
    try:
        cap = int(pltpu.get_tpu_info().vmem_capacity_bytes)
    except Exception:
        pass
    return cap


def mlp_forward(x, w1, b1, w2, b2, *, tm=512, th=2048,
                compute_dtype=jnp.bfloat16, _force_th=None):
    """GPT MLP forward: gelu(x @ w1 + b1) @ w2 + b2 (dropout = eval identity).

    x: (B, S, D).  w1: (D, 4D), b1: (4D,), w2: (4D, D), b2: (D,).

    tm: row-tile hint (multiple of 8; large so chunked weights stay MXU-bound).
    th: hidden-dim chunk hint when weights cannot stay VMEM-resident.
    compute_dtype: matmul dtype for x / w1 / w2 (default bf16; accumulation is
      always f32).  Pass None to keep the original (f32) dtypes.
    """
    B, S, D = x.shape
    H = w1.shape[1]
    M = B * S
    out_dtype = x.dtype

    if compute_dtype is not None:
        x = x.astype(compute_dtype)
        w1 = w1.astype(compute_dtype)
        w2 = w2.astype(compute_dtype)

    x_isz = jnp.dtype(x.dtype).itemsize
    w_isz = jnp.dtype(w1.dtype).itemsize
    o_isz = jnp.dtype(out_dtype).itemsize

    vmem_cap = _vmem_capacity_bytes()
    budget = int(0.80 * vmem_cap)

    # ---- row tile ----------------------------------------------------------
    tm = max(8, _round_up(min(tm, _round_up(M, 8)), 8))
    if M >= 512:
        # Keep >= 2 row tiles so both v7x TensorCores get work on the
        # "parallel" axis (no effect on single-TC v5e/v6e).
        tm = min(tm, _round_up(-(-M // 2), 8))

    def vmem_need(tm_, th_):
        return (2 * tm_ * D * x_isz           # x blocks (double-buffered)
                + 2 * D * th_ * w_isz         # w1 chunk (double-buffered)
                + 2 * th_ * D * w_isz         # w2 chunk (double-buffered)
                + 2 * th_ * 4 + 2 * D * 4     # bias chunks (f32)
                + 2 * tm_ * D * o_isz         # out blocks
                + tm_ * D * 4)                # f32 accumulator scratch

    # ---- hidden-dim chunk --------------------------------------------------
    if _force_th is not None:
        th = _force_th                        # testing hook only
    elif vmem_need(tm, H) <= budget:
        # Resident weights: constant index_map => DMA'd once, kept in VMEM.
        th = H
    else:
        cands = sorted({t for t in range(128, H + 1, 128)
                        if H % t == 0 and t <= max(th, 128)}, reverse=True)
        if not cands:
            cands = [H]                       # H < 128 or no 128-mult divisor
        th = next((t for t in cands if vmem_need(tm, t) <= budget), cands[-1])
        while tm > 8 and vmem_need(tm, th) > budget:
            tm = _round_up(tm // 2, 8)

    # ---- padding / reshape -------------------------------------------------
    M_pad = _round_up(M, tm)
    x_flat = x.reshape(M, D)
    if M_pad != M:
        x_flat = jnp.pad(x_flat, ((0, M_pad - M), (0, 0)))

    b1_2d = b1.reshape(1, H).astype(jnp.float32)
    b2_2d = b2.reshape(1, D).astype(jnp.float32)

    n_rows = M_pad // tm
    n_k = H // th

    vmem_limit = min(max(int(1.2 * vmem_need(tm, th)) + (2 << 20), 32 << 20),
                     int(0.90 * vmem_cap))

    weight_bytes = (w1.size + w2.size) * w_isz
    cost = pl.CostEstimate(
        flops=4 * M_pad * D * H,              # two matmuls
        transcendentals=M_pad * H,            # tanh in gelu
        bytes_accessed=(x_flat.size * x_isz
                        + weight_bytes * (n_rows if n_k > 1 else 1)
                        + (b1_2d.size + b2_2d.size) * 4
                        + M_pad * D * o_isz),
    )

    out_flat = pl.pallas_call(
        _mlp_kernel,
        out_shape=jax.ShapeDtypeStruct((M_pad, D), out_dtype),
        grid_spec=pltpu.PrefetchScalarGridSpec(
            num_scalar_prefetch=0,
            grid=(n_rows, n_k),                               # reduction last
            in_specs=[
                pl.BlockSpec((tm, D), lambda i, k: (i, 0)),   # x rows
                pl.BlockSpec((D, th), lambda i, k: (0, k)),   # w1 chunk
                pl.BlockSpec((1, th), lambda i, k: (0, k)),   # b1 chunk
                pl.BlockSpec((th, D), lambda i, k: (k, 0)),   # w2 chunk
                pl.BlockSpec((1, D), lambda i, k: (0, 0)),    # b2
            ],
            out_specs=pl.BlockSpec((tm, D), lambda i, k: (i, 0)),
            scratch_shapes=[pltpu.VMEM((tm, D), jnp.float32)],
        ),
        compiler_params=pltpu.CompilerParams(
            dimension_semantics=("parallel", "arbitrary"),
            vmem_limit_bytes=vmem_limit,
        ),
        cost_estimate=cost,
    )(x_flat, w1, b1_2d, w2, b2_2d)

    if M_pad != M:
        out_flat = out_flat[:M]
    return out_flat.reshape(B, S, D)


def mlp_reference(x, w1, b1, w2, b2):
    """Pure-JAX reference of the PyTorch forward (eval mode), in f32."""
    h = jnp.einsum("bsd,dh->bsh", x, w1) + b1
    c = math.sqrt(2.0 / math.pi)
    h = 0.5 * h * (1.0 + jnp.tanh(c * (h + 0.044715 * h ** 3)))
    y = jnp.einsum("bsh,hd->bsd", h, w2) + b2
    return y  # LockedDropout is identity at eval


if __name__ == "__main__":
    def rel_err(a, b):
        a = a.astype(jnp.float32)
        b = b.astype(jnp.float32)
        return float(jnp.linalg.norm(a - b) / (jnp.linalg.norm(b) + 1e-12))

    key = jax.random.PRNGKey(0)

    # ---- primary test: bf16 compute, resident weights (n_state=32, H=128) --
    B, S, D = 2, 8, 32
    H = 4 * D
    kx, kw1, kb1, kw2, kb2 = jax.random.split(key, 5)
    x = jax.random.normal(kx, (B, S, D), dtype=jnp.float32)
    w1 = 0.02 * jax.random.normal(kw1, (D, H), dtype=jnp.float32)   # Conv1D init std
    b1 = 0.02 * jax.random.normal(kb1, (H,), dtype=jnp.float32)
    w2 = 0.02 * jax.random.normal(kw2, (H, D), dtype=jnp.float32)
    b2 = 0.02 * jax.random.normal(kb2, (D,), dtype=jnp.float32)

    out = jax.block_until_ready(mlp_forward(x, w1, b1, w2, b2))
    ref = mlp_reference(x, w1, b1, w2, b2)
    assert out.shape == (B, S, D)
    err = rel_err(out, ref)
    assert err < 3e-2, f"bf16 kernel mismatch vs f32 reference: rel_err={err}"

    # ---- secondary test: f32 path, chunked reduction (n_k=2) + row padding -
    B2, S2, D2 = 2, 23, 64
    H2 = 4 * D2
    kx2, kw3, kw4 = jax.random.split(kb2, 3)
    x2 = jax.random.normal(kx2, (B2, S2, D2), dtype=jnp.float32)
    w3 = 0.02 * jax.random.normal(kw3, (D2, H2), dtype=jnp.float32)
    b3 = jnp.zeros((H2,), dtype=jnp.float32)
    w4 = 0.02 * jax.random.normal(kw4, (H2, D2), dtype=jnp.float32)
    b4 = jnp.zeros((D2,), dtype=jnp.float32)

    out2 = jax.block_until_ready(
        mlp_forward(x2, w3, b3, w4, b4, tm=16, compute_dtype=None,
                    _force_th=128))
    ref2 = mlp_reference(x2, w3, b3, w4, b4)
    assert out2.shape == (B2, S2, D2)
    err2 = rel_err(out2, ref2)
    assert err2 < 1e-3, f"f32 chunked kernel mismatch: rel_err={err2}"

    print("KERNEL_OK")
</pallas_src>

<mosaic_0001>
module attributes {stable_mosaic.version = 11 : i64} {
  func.func @_mlp_kernel(%arg0: i32, %arg1: i32, %arg2: memref<16x32xbf16, #tpu.memory_space<vmem>>, %arg3: memref<32x128xbf16, #tpu.memory_space<vmem>>, %arg4: memref<1x128xf32, #tpu.memory_space<vmem>>, %arg5: memref<128x32xbf16, #tpu.memory_space<vmem>>, %arg6: memref<1x32xf32, #tpu.memory_space<vmem>>, %arg7: memref<16x32xf32, #tpu.memory_space<vmem>>, %arg8: memref<16x32xf32, #tpu.memory_space<vmem>>) attributes {dimension_semantics = [#tpu.dimension_semantics<parallel>, #tpu.dimension_semantics<arbitrary>], iteration_bounds = array<i64: 1, 1>, scalar_prefetch = 0 : i64, scratch_operands = 1 : i64, tpu.core_type = #tpu.core_type<tc>, window_params = [{transform_indices = @transform_0, window_bounds = array<i64: 16, 32>}, {transform_indices = @transform_1, window_bounds = array<i64: 32, 128>}, {transform_indices = @transform_2, window_bounds = array<i64: 1, 128>}, {transform_indices = @transform_3, window_bounds = array<i64: 128, 32>}, {pipeline_mode = #tpu.pipeline_mode<synchronous>, transform_indices = @transform_4, window_bounds = array<i64: 1, 32>}, {transform_indices = @transform_5, window_bounds = array<i64: 16, 32>}]} {
    %c0_i32 = arith.constant 0 : i32
    %0 = arith.cmpi eq, %arg1, %c0_i32 : i32
    %1 = arith.extui %0 : i1 to i32
    %c0_i32_0 = arith.constant 0 : i32
    %2 = arith.cmpi ne, %1, %c0_i32_0 : i32
    scf.if %2 {
      %cst_20 = arith.constant 0.000000e+00 : f32
      %32 = vector.broadcast %cst_20 : f32 to vector<16x32xf32>
      %c0_21 = arith.constant 0 : index
      %c0_22 = arith.constant 0 : index
      %33 = vector.load %arg8[%c0_21, %c0_22] : memref<16x32xf32, #tpu.memory_space<vmem>>, vector<16x32xf32>
      tpu.vector_store %arg8[%c0_21, %c0_22], %32 {strides = array<i32>} : memref<16x32xf32, #tpu.memory_space<vmem>>, vector<16x32xf32>,
    } else {
    }
    %c0 = arith.constant 0 : index
    %c0_1 = arith.constant 0 : index
    %3 = vector.load %arg2[%c0, %c0_1] : memref<16x32xbf16, #tpu.memory_space<vmem>>, vector<16x32xbf16>
    %c0_2 = arith.constant 0 : index
    %c0_3 = arith.constant 0 : index
    %4 = vector.load %arg3[%c0_2, %c0_3] : memref<32x128xbf16, #tpu.memory_space<vmem>>, vector<32x128xbf16>
    %cst = arith.constant dense<0.000000e+00> : vector<16x128xf32>
    %5 = tpu.matmul %3, %4, %cst {dimension_numbers = #tpu.dot_dimension_numbers<[1], [0], [0], [1], [0, 0, 1, 1], [], []>} : vector<16x32xbf16>, vector<32x128xbf16>, vector<16x128xf32> -> vector<16x128xf32>
    %c0_4 = arith.constant 0 : index
    %c0_5 = arith.constant 0 : index
    %6 = vector.load %arg4[%c0_4, %c0_5] : memref<1x128xf32, #tpu.memory_space<vmem>>, vector<1x128xf32>
    %7 = vector.broadcast %6 : vector<1x128xf32> to vector<16x128xf32>
    %8 = arith.addf %5, %7 : vector<16x128xf32>
    %9 = arith.mulf %8, %8 : vector<16x128xf32>
    %cst_6 = arith.constant 0.797884583 : f32
    %10 = vector.broadcast %cst_6 : f32 to vector<16x128xf32>
    %11 = arith.mulf %10, %8 : vector<16x128xf32>
    %cst_7 = arith.constant 4.471500e-02 : f32
    %12 = vector.broadcast %cst_7 : f32 to vector<16x128xf32>
    %13 = arith.mulf %12, %9 : vector<16x128xf32>
    %cst_8 = arith.constant 1.000000e+00 : f32
    %14 = vector.broadcast %cst_8 : f32 to vector<16x128xf32>
    %15 = arith.addf %14, %13 : vector<16x128xf32>
    %16 = arith.mulf %11, %15 : vector<16x128xf32>
    %cst_9 = arith.constant 5.000000e-01 : f32
    %17 = vector.broadcast %cst_9 : f32 to vector<16x128xf32>
    %18 = arith.mulf %17, %8 : vector<16x128xf32>
    %19 = math.tanh %16 : vector<16x128xf32>
    %cst_10 = arith.constant 1.000000e+00 : f32
    %20 = vector.broadcast %cst_10 : f32 to vector<16x128xf32>
    %21 = arith.addf %20, %19 : vector<16x128xf32>
    %22 = arith.mulf %18, %21 : vector<16x128xf32>
    %c0_11 = arith.constant 0 : index
    %c0_12 = arith.constant 0 : index
    %23 = vector.load %arg8[%c0_11, %c0_12] : memref<16x32xf32, #tpu.memory_space<vmem>>, vector<16x32xf32>
    %24 = arith.truncf %22 : vector<16x128xf32> to vector<16x128xbf16>
    %c0_13 = arith.constant 0 : index
    %c0_14 = arith.constant 0 : index
    %25 = vector.load %arg5[%c0_13, %c0_14] : memref<128x32xbf16, #tpu.memory_space<vmem>>, vector<128x32xbf16>
    %cst_15 = arith.constant dense<0.000000e+00> : vector<16x32xf32>
    %26 = tpu.matmul %24, %25, %cst_15 {dimension_numbers = #tpu.dot_dimension_numbers<[1], [0], [0], [1], [0, 0, 1, 1], [], []>} : vector<16x128xbf16>, vector<128x32xbf16>, vector<16x32xf32> -> vector<16x32xf32>
    %27 = arith.addf %23, %26 : vector<16x32xf32>
    %c0_16 = arith.constant 0 : index
    %c0_17 = arith.constant 0 : index
    %28 = vector.load %arg8[%c0_16, %c0_17] : memref<16x32xf32, #tpu.memory_space<vmem>>, vector<16x32xf32>
    tpu.vector_store %arg8[%c0_16, %c0_17], %27 {strides = array<i32>} : memref<16x32xf32, #tpu.memory_space<vmem>>, vector<16x32xf32>,
    %c0_i32_18 = arith.constant 0 : i32
    %29 = arith.cmpi eq, %arg1, %c0_i32_18 : i32
    %30 = arith.extui %29 : i1 to i32
    %c0_i32_19 = arith.constant 0 : i32
    %31 = arith.cmpi ne, %30, %c0_i32_19 : i32
    scf.if %31 {
      %c0_20 = arith.constant 0 : index
      %c0_21 = arith.constant 0 : index
      %32 = vector.load %arg8[%c0_20, %c0_21] : memref<16x32xf32, #tpu.memory_space<vmem>>, vector<16x32xf32>
      %c0_22 = arith.constant 0 : index
      %c0_23 = arith.constant 0 : index
      %33 = vector.load %arg6[%c0_22, %c0_23] : memref<1x32xf32, #tpu.memory_space<vmem>>, vector<1x32xf32>
      %34 = vector.broadcast %33 : vector<1x32xf32> to vector<16x32xf32>
      %35 = arith.addf %32, %34 : vector<16x32xf32>
      %c0_24 = arith.constant 0 : index
      %c0_25 = arith.constant 0 : index
      %36 = vector.load %arg7[%c0_24, %c0_25] : memref<16x32xf32, #tpu.memory_space<vmem>>, vector<16x32xf32>
      tpu.vector_store %arg7[%c0_24, %c0_25], %35 {strides = array<i32>} : memref<16x32xf32, #tpu.memory_space<vmem>>, vector<16x32xf32>,
    } else {
    }
    return
  }
  func.func @transform_0(%arg0: i32, %arg1: i32) -> (i32, i32) {
    %c0_i32 = arith.constant 0 : i32
    %c0_i32_0 = arith.constant 0 : i32
    return %arg0, %c0_i32 : i32, i32
  }
  func.func @transform_1(%arg0: i32, %arg1: i32) -> (i32, i32) {
    %c0_i32 = arith.constant 0 : i32
    %c0_i32_0 = arith.constant 0 : i32
    return %c0_i32, %arg1 : i32, i32
  }
  func.func @transform_2(%arg0: i32, %arg1: i32) -> (i32, i32) {
    %c0_i32 = arith.constant 0 : i32
    %c0_i32_0 = arith.constant 0 : i32
    return %c0_i32, %arg1 : i32, i32
  }
  func.func @transform_3(%arg0: i32, %arg1: i32) -> (i32, i32) {
    %c0_i32 = arith.constant 0 : i32
    %c0_i32_0 = arith.constant 0 : i32
    return %arg1, %c0_i32 : i32, i32
  }
  func.func @transform_4(%arg0: i32, %arg1: i32) -> (i32, i32) {
    %c0_i32 = arith.constant 0 : i32
    %c0_i32_0 = arith.constant 0 : i32
    %c0_i32_1 = arith.constant 0 : i32
    return %c0_i32, %c0_i32_0 : i32, i32
  }
  func.func @transform_5(%arg0: i32, %arg1: i32) -> (i32, i32) {
    %c0_i32 = arith.constant 0 : i32
    %c0_i32_0 = arith.constant 0 : i32
    return %arg0, %c0_i32 : i32, i32
  }
}

</mosaic_0001>

<bundles_post_ra>
// kernel: tpu_custom_call.1
= control target key start
LH: loop header
LB: loop body
LE: loop exit
PB: predicated region body
PF: predicated region fallthrough
CT: control target
= control target key end

     0   :  { %v364_v1 = vmov 0.0   ;;  %vm365_vm0 = vmmov 0   ;;  %vm26_vm1 = vcmask 261120   ;;  %s457_s0 = inlined_call_operand.vmem [shape: bf16[16,32], index: 0, kind: input, shape index: {}]   ;;  %s458_s1 = inlined_call_operand.vmem [shape: bf16[32,128], index: 1, kind: input, shape index: {}]   ;;  %s459_s2 = inlined_call_operand.vmem [shape: f32[1,128], index: 2, kind: input, shape index: {}]   ;;  %s460_s3 = inlined_call_operand.vmem [shape: bf16[128,32], index: 3, kind: input, shape index: {}]   ;;  %s461_s4 = inlined_call_operand.vmem [shape: f32[1,32], index: 4, kind: input, shape index: {}]   ;;  %s462_s5 = inlined_call_operand.hbm [shape: f32[16,32], index: 5, kind: output, shape index: {}]  }
   0x1   :  { %v325_v0 = vld [vmem:[%s458_s1] sm:$0xff]   ;;  %292 = vmatprep.subr.bf16.mxu0 %v364_v1  ;;  %300 = vmatprep.subr.bf16.mxu1 %v364_v1  ;;  %v326_v2 = vld [vmem:[%s458_s1 + $0x8] sm:$0xff]   ;;  %27 = vst.msk [vmem:[#allocation2] sm:$0xff] %vm26_vm1, %v364_v1  ;;  %28 = vst.msk [vmem:[#allocation2 + $0x8] sm:$0xff] %vm26_vm1, %v364_v1 }
   0x2   :  { %293 = vmatpush3.bf16.msra.mxu0 %v325_v0  ;;  %296 = vmatprep.mubr.msk.bf16.mxu0 %vm365_vm0, %v364_v1  ;;  %v328_v3 = vld [vmem:[%s460_s3] sm:$0xff]  }
   0x3   :  { %294 = vmatprep.subr.bf16.mxu0 %v364_v1  ;;  %316 = vmatprep.mubr.msk.bf16.mxu1 %vm365_vm0, %v364_v1  ;;  %v327_v4 = vld [vmem:[%s457_s0] sm:$0xff]  }
   0x4   :  { %301 = vmatpush3.bf16.msra.mxu1 %v328_v3 }
   0x5   :  { %302 = vmatprep.subr.bf16.mxu1 %v364_v1 }
   0x6   :  { %295 = vmatpush3.bf16.msra.mxu0 %v326_v2 }
   0x9   :  { %297 = vmatmul.mubr.msk.bf16.vlgmr.msra.gmra.mrb[0].mxu0 %vm26_vm1, %v327_v4 }
   0xa   :  { %10 = vsyncpa [#allocation4], 0  ;;  %v329_v5 = vld [vmem:[%s460_s3 + $0x8] sm:$0xff]   ;;  %v330_v6 = vld [vmem:[%s460_s3 + $0x10] sm:$0xff]   ;;  %s366_s15 = smov [#allocation3]  }
   0xb   :  { %303 = vmatpush3.bf16.msra.mxu1 %v329_v5  ;;  %v331_v7 = vld [vmem:[%s460_s3 + $0x18] sm:$0xff]   ;;  %v332_v8 = vld [vmem:[%s460_s3 + $0x20] sm:$0xff]   ;;  %v333_v9 = vld [vmem:[%s460_s3 + $0x28] sm:$0xff]   ;;  %s255_s16 = sshll.u32 %s366_s15, 4  ;;  %s256_s16 = int_to_ptr.vmem [resolvable:$true] %s255_s16 }
   0xc   :  { %304 = vmatprep.subr.bf16.mxu1 %v364_v1  ;;  %v334_v10 = vld [vmem:[%s460_s3 + $0x30] sm:$0xff]   ;;  %v335_v11 = vld [vmem:[%s460_s3 + $0x38] sm:$0xff]   ;;  %v266_v12 = vld [vmem:[%s459_s2] ss:$0 sm:$0xff]  ;;  %s340_s17 = scalar_lea.vmem %s256_s16, 256  ;;  %p345_p1 = scmp.lt.s32.totalorder %s256_s16, %s256_s16 }
   0xd   :  { %v122_v38 = vld [vmem:[#allocation2] sm:$0xff]  ;;  %v123_v40 = vld [vmem:[#allocation2 + $0x8] sm:$0xff]  ;;  %p341_p0 = scmp.ne.s32.totalorder %s256_s16, %s340_s17  ;;  %p346_p2 = scmp.lt.s32.totalorder %s340_s17, %s340_s17 }
   0xe   :  { %v279_v46 = vld [vmem:[%s461_s4] ss:$0 sm:$0xff] }
   0xf   :  { %305 = vmatpush3.bf16.msra.mxu1 %v330_v6  ;;  %p347_p3 = por %p346_p2, %p345_p1 }
  0x10   :  { %306 = vmatprep.subr.bf16.mxu1 %v364_v1 }
  0x11   :  { %p348_p4 = pnand %p347_p3, %p341_p0 }
  0x13   :  { %307 = vmatpush3.bf16.msra.mxu1 %v331_v7 }
  0x14   :  { %308 = vmatprep.subr.bf16.mxu1 %v364_v1 }
  0x17   :  { %309 = vmatpush3.bf16.msra.mxu1 %v332_v8 }
  0x18   :  { %310 = vmatprep.subr.bf16.mxu1 %v364_v1 }
  0x1b   :  { %311 = vmatpush3.bf16.msra.mxu1 %v333_v9 }
  0x1c   :  { %312 = vmatprep.subr.bf16.mxu1 %v364_v1 }
  0x1f   :  { %313 = vmatpush3.bf16.msra.mxu1 %v334_v10 }
  0x20   :  { %314 = vmatprep.subr.bf16.mxu1 %v364_v1 }
  0x23   :  { %315 = vmatpush3.bf16.msra.mxu1 %v335_v11 }
  0xdc   :  { %v97_v13 = vpop.f32.mrb[0].mxu0 }
  0xdd   :  { %v98_v14 = vadd.f32 %v266_v12, %v97_v13  ;;  %v298_v15 = vpop.f32.mrb[1].mxu0 }
  0xde   :  { %v100_v16 = vpop.f32.mrb[2].mxu0 }
  0xdf   :  { %v104_v17 = vmul.f32 %v98_v14, %v98_v14  ;;  %v101_v18 = vadd.f32 %v266_v12, %v100_v16  ;;  %v299_v19 = vpop.f32.mrb[3].mxu0  ;;  %v106_v22 = vmul.f32 0.7978846, %v98_v14  ;;  %v114_v32 = vmul.f32 0.5, %v98_v14 }
  0xe1   :  { %v108_v20 = vmul.f32 0.044715, %v104_v17  ;;  %v105_v21 = vmul.f32 %v101_v18, %v101_v18  ;;  %v107_v26 = vmul.f32 0.7978846, %v101_v18  ;;  %v115_v33 = vmul.f32 0.5, %v101_v18 }
  0xe3   :  { %v110_v23 = vadd.f32 1.0, %v108_v20  ;;  %v109_v24 = vmul.f32 0.044715, %v105_v21 }
  0xe5   :  { %v112_v25 = vmul.f32 %v110_v23, %v106_v22  ;;  %v111_v27 = vadd.f32 1.0, %v109_v24 }
  0xe7   :  { %336 = vtanh.f32 %v112_v25  ;;  %v113_v28 = vmul.f32 %v111_v27, %v107_v26 }
  0xe9   :  { %338 = vtanh.f32 %v113_v28 }
  0xf1   :  { %v337_v29 = vpop.eup %336 }
  0xf2   :  { %v118_v30 = vadd.f32 1.0, %v337_v29 }
  0xf3   :  { %v339_v31 = vpop.eup %338 }
  0xf4   :  { %v119_v34 = vadd.f32 1.0, %v339_v31  ;;  %v120_v35 = vmul.f32 %v118_v30, %v114_v32 }
  0xf6   :  { %v121_v36 = vmul.f32 %v119_v34, %v115_v33 }
  0xf8   :  { %v124_v37 = vpack.c.bf16 %v121_v36, %v120_v35 }
  0xfa   :  { %317 = vmatmul.mubr.bf16.vlgmr.msra.gmra.mrb[0].mxu1 %v124_v37 }
 0x1cd   :  { %v223_v39 = vpop.f32.mrb[0].mxu1 }
 0x1ce   :  { %v230_v41 = vadd.f32 %v223_v39, %v122_v38  ;;  %v318_v42 = vpop.f32.mrb[1].mxu1 }
 0x1cf   :  { %v226_v43 = vpop.f32.mrb[2].mxu1 }
 0x1d0   :  { %232 = vst.msk [vmem:[#allocation2] sm:$0xff] %vm26_vm1, %v230_v41  ;;  %v231_v44 = vadd.f32 %v226_v43, %v123_v40  ;;  %v319_v45 = vpop.f32.mrb[3].mxu1 }
 0x1d2   :  { %233 = vst.msk [vmem:[#allocation2 + $0x8] sm:$0xff] %vm26_vm1, %v231_v44 }
 0x1d7   :  { %v237_v47 = vld [vmem:[#allocation2] sm:$0xff] }
 0x1d8   :  { %v246_v48 = vadd.f32 %v279_v46, %v237_v47 }
 0x1d9   :  { %v238_v49 = vld [vmem:[#allocation2 + $0x8] sm:$0xff] }
 0x1da   :  { %v247_v50 = vadd.f32 %v279_v46, %v238_v49  ;;  %248 = vst.msk [vmem:[#allocation3] sm:$0xff] %vm26_vm1, %v246_v48 }
 0x1dc   :  { %249 = vst.msk [vmem:[#allocation3 + $0x8] sm:$0xff] %vm26_vm1, %v247_v50 }
 0x1dd   :  { %351 = shalt.err (!%p348_p4)
}
 0x1de   :  { %s352_s19 = scalar_lea.hbm %s462_s5, 256 }
 0x1df   :  { %p353_p5 = scmp.ne.s32.totalorder %s462_s5, %s352_s19  ;;  %p356_p6 = scmp.lt.u32.totalorder %s352_s19, %s462_s5 }
 0x1e1   :  { %p358_p7 = pnand %p356_p6, %p353_p5 }
 0x1e3   :  { %361 = shalt.err (!%p358_p7)
}
 0x1e4   :  { %s367_s24 = smov 128   ;;  %s368_s25 = smov 8  }
 0x1e5   :  { %261 = dma.vmem_to_hbm [thread:$0]  %s256_s16, 256, %s462_s5, [#allocation4], %s367_s24, %s367_s24, %s368_s25  }
 0x1e6   :  { %362 = dma.done.wait [#allocation4], 256  }
 0x1e7   :  { %363 = vsyncadd [#allocation4], 4294967040 }
 0x1e8   :  { %265 = vsyncpa [#allocation4], 1 }

</bundles_post_ra>
